<compile_context>
chip_gen: v7x
topology: tpu7x:2x2x1
jax: 0.10.0
libtpu: 0.0.40
codegen_flags: <defaults>
</compile_context>

<pallas_src>
import functools

import jax
import jax.numpy as jnp
from jax import lax
from jax.experimental import pallas as pl
from jax.experimental.pallas import tpu as pltpu

EPS = 1e-5
LANE = 128


def _round_up(v, m):
    return (v + m - 1) // m * m


def _cdiv(a, b):
    return (a + b - 1) // b


# ---------------------------------------------------------------------------
# In-kernel helpers
# ---------------------------------------------------------------------------
def _tap_slice(z_ref, k, *, stride, L1, Cp, Bn):
    """Contiguous row slice of the stride-folded input for conv tap k."""
    shift, grp = k // stride, k % stride
    xs = z_ref[:, shift:shift + L1, grp * Cp:(grp + 1) * Cp]   # (Bn, L1, Cp)
    return xs.reshape(Bn * L1, Cp)


def _conv_from_z(z_ref, w_ref, *, ktaps, stride, L1, Cp, Bn):
    """k-tap conv as a sum of shifted matmuls (f32 accumulation on the MXU)."""
    acc = None
    for k in range(ktaps):
        xs = _tap_slice(z_ref, k, stride=stride, L1=L1, Cp=Cp, Bn=Bn)
        part = jnp.dot(xs, w_ref[k], preferred_element_type=jnp.float32)
        acc = part if acc is None else acc + part
    return acc


# ---------------------------------------------------------------------------
# Stage A: conv1 (+ 1x1 projection conv) + packed BN partial sums
# ---------------------------------------------------------------------------
def _stage_a_proj_kernel(z_ref, w1_ref, wsc_ref, y1_ref, ysc_ref, st_ref,
                         *, stride, L1, Cp, Bn):
    acc1 = _conv_from_z(z_ref, w1_ref, ktaps=3, stride=stride, L1=L1, Cp=Cp, Bn=Bn)
    # 1x1 projection conv with stride: x[s*l] == x_pad[s*l + 1]  -> tap 1.
    xs = _tap_slice(z_ref, 1, stride=stride, L1=L1, Cp=Cp, Bn=Bn)
    accs = jnp.dot(xs, wsc_ref[...], preferred_element_type=jnp.float32)
    y1_ref[...] = acc1.astype(y1_ref.dtype)
    ysc_ref[...] = accs.astype(ysc_ref.dtype)
    st_ref[0] = jnp.concatenate(
        [jnp.sum(acc1, axis=0, keepdims=True),
         jnp.sum(acc1 * acc1, axis=0, keepdims=True),
         jnp.sum(accs, axis=0, keepdims=True),
         jnp.sum(accs * accs, axis=0, keepdims=True)], axis=0)


def _stage_a_id_kernel(z_ref, w1_ref, y1_ref, st_ref, *, stride, L1, Cp, Bn):
    acc1 = _conv_from_z(z_ref, w1_ref, ktaps=3, stride=stride, L1=L1, Cp=Cp, Bn=Bn)
    y1_ref[...] = acc1.astype(y1_ref.dtype)
    st_ref[0] = jnp.concatenate(
        [jnp.sum(acc1, axis=0, keepdims=True),
         jnp.sum(acc1 * acc1, axis=0, keepdims=True)], axis=0)


# ---------------------------------------------------------------------------
# Stage B: bn1 + relu fused with conv2 (k=3, s=1, pad=1) + bn2 partial sums
# ---------------------------------------------------------------------------
def _stage_b_kernel(y1_ref, w2_ref, sc1_ref, sh1_ref, y2_ref, st_ref,
                    *, L1, Rb, cdt):
    # bn1 (pre-folded per-channel scale/shift) + relu, f32 on the VPU.
    out1 = jnp.maximum(
        y1_ref[...].astype(jnp.float32) * sc1_ref[...] + sh1_ref[...], 0.0)
    # Within-sample row index: rows that wrap across a sample (or block)
    # boundary after the sublane roll must be zeroed -> conv padding=1.
    # TODO(synk): replace the full-tile iota/where with narrow boundary-row
    #             stores (minor VALU win when stage B is near MXU/VPU balance).
    row = lax.broadcasted_iota(jnp.int32, (Rb, Pp_of(out1)), 0) % L1 \
        if False else lax.broadcasted_iota(jnp.int32, out1.shape, 0) % L1
    acc = jnp.dot(out1.astype(cdt), w2_ref[1], preferred_element_type=jnp.float32)
    down = jnp.where(row == 0, 0.0, pltpu.roll(out1, 1, 0))            # out1[l-1]
    acc = acc + jnp.dot(down.astype(cdt), w2_ref[0],
                        preferred_element_type=jnp.float32)
    up = jnp.where(row == L1 - 1, 0.0, pltpu.roll(out1, Rb - 1, 0))    # out1[l+1]
    acc = acc + jnp.dot(up.astype(cdt), w2_ref[2],
                        preferred_element_type=jnp.float32)
    y2_ref[...] = acc.astype(y2_ref.dtype)
    st_ref[0] = jnp.concatenate(
        [jnp.sum(acc, axis=0, keepdims=True),
         jnp.sum(acc * acc, axis=0, keepdims=True)], axis=0)


def Pp_of(x):   # helper only referenced from dead branch above; keeps lints quiet
    return x.shape[-1]


# ---------------------------------------------------------------------------
# Stage C: bn2 (+ shortcut bn) + residual add + relu (flat elementwise)
# ---------------------------------------------------------------------------
def _stage_c_proj_kernel(y2_ref, ysc_ref, sc2_ref, sh2_ref, scs_ref, shs_ref,
                         o_ref):
    main = y2_ref[...].astype(jnp.float32) * sc2_ref[...] + sh2_ref[...]
    short = ysc_ref[...].astype(jnp.float32) * scs_ref[...] + shs_ref[...]
    o_ref[...] = jnp.maximum(main + short, 0.0).astype(o_ref.dtype)


def _stage_c_id_kernel(y2_ref, xsc_ref, sc2_ref, sh2_ref, o_ref):
    main = y2_ref[...].astype(jnp.float32) * sc2_ref[...] + sh2_ref[...]
    o_ref[...] = jnp.maximum(main + xsc_ref[...].astype(jnp.float32),
                             0.0).astype(o_ref.dtype)


# ---------------------------------------------------------------------------
# Wrapper-side glue
# ---------------------------------------------------------------------------
def _prep_conv_w(w, cin_p, cout_p, cdt):
    """PyTorch Conv1d weight (P, C, K) -> (K, cin_p, cout_p), zero padded."""
    wk = jnp.transpose(w, (2, 1, 0))
    wk = jnp.pad(wk, ((0, 0), (0, cin_p - wk.shape[1]), (0, cout_p - wk.shape[2])))
    return wk.astype(cdt)


def _bn_affine(sum_blk, sq_blk, gamma_p, beta_p, count):
    """Fold training-mode batch stats into per-channel scale/shift (f32).

    TODO(synk): E[x^2]-E[x]^2 in f32 can cancel for very large N*L or large
    activation magnitudes; switch to per-block centered (Welford) merges then.
    """
    mean = jnp.sum(sum_blk, axis=0) / count
    var = jnp.maximum(jnp.sum(sq_blk, axis=0) / count - mean * mean, 0.0)
    scale = gamma_p * lax.rsqrt(var + EPS)
    shift = beta_p - mean * scale
    pp = scale.shape[0]
    return (scale.reshape(1, pp).astype(jnp.float32),
            shift.reshape(1, pp).astype(jnp.float32))


def _pick_bn(N, L1, Lz, s, Cp, Pp, itm, has_proj,
             row_cap=2048, vmem_budget=24 * 1024 * 1024):
    """Samples per grid step: big-M matmuls + VMEM fit + >=2 steps when N>1."""
    def step_bytes(bn):
        zb = bn * Lz * s * Cp * itm                        # stage A input block
        yb = bn * L1 * Pp * itm * (2 if has_proj else 1)   # pre-BN outputs
        ob = bn * L1 * Pp * 4                              # stage C f32 output
        return 2 * (zb + yb + ob)                          # double-buffered
    # Row blocks must be sublane-aligned (multiple of 8) or cover the array.
    cands = [d for d in range(1, N + 1)
             if N % d == 0 and ((d * L1) % 8 == 0 or d == N)]
    fits = [d for d in cands
            if d * L1 <= row_cap and step_bytes(d) <= vmem_budget]
    if not fits:
        fits = cands[:1]
    multi = [d for d in fits if N // d >= 2]   # feed both v7x TensorCores
    return max(multi) if multi else max(fits)


@functools.partial(jax.jit, static_argnames=("stride", "compute_dtype"))
def basic_block_forward(x, params, stride, compute_dtype=jnp.bfloat16):
    """x: (N, C_in, L) f32 -> (N, planes, L_out) f32 (train-mode BatchNorm)."""
    w1, g1, b1, w2, g2, b2, wsc, gsc, bsc = params
    N, Cin, L = x.shape
    P = w1.shape[0]
    s = int(stride)
    cdt = jnp.dtype(compute_dtype)
    itm = cdt.itemsize
    has_proj = wsc is not None

    Cp = _round_up(Cin, LANE)
    Pp = _round_up(P, LANE)
    L1 = (L + 2 - 3) // s + 1                  # conv1 / shortcut output length
    Lz = _cdiv(s * (L1 - 1) + 3, s)
    R = N * L1

    # ---- single layout pass: NCL -> NLC, cast, pad (conv pad=1 + stride-fold
    # padding, channel pad to 128), then a FREE reshape folding the stride
    # into the lane dimension so every conv tap is a contiguous row slice.
    z = jnp.pad(jnp.transpose(x, (0, 2, 1)).astype(cdt),
                ((0, 0), (1, Lz * s - (L + 1)), (0, Cp - Cin))
                ).reshape(N, Lz, s * Cp)

    w1m = _prep_conv_w(w1, Cp, Pp, cdt)        # (3, Cp, Pp)
    w2m = _prep_conv_w(w2, Pp, Pp, cdt)        # (3, Pp, Pp)
    g1p, b1p = jnp.pad(g1, (0, Pp - P)), jnp.pad(b1, (0, Pp - P))
    g2p, b2p = jnp.pad(g2, (0, Pp - P)), jnp.pad(b2, (0, Pp - P))

    Bn = _pick_bn(N, L1, Lz, s, Cp, Pp, itm, has_proj)
    nblk = N // Bn
    Rb = Bn * L1

    cparams = pltpu.CompilerParams(dimension_semantics=("parallel",),
                                   vmem_limit_bytes=32 * 1024 * 1024)
    z_spec = pl.BlockSpec((Bn, Lz, s * Cp), lambda i: (i, 0, 0))
    row_spec = lambda: pl.BlockSpec((Rb, Pp), lambda i: (i, 0))
    vec_spec = lambda: pl.BlockSpec((1, Pp), lambda i: (0, 0))
    act_shape = jax.ShapeDtypeStruct((R, Pp), cdt)

    # ---- stage A: conv1 (+ projection conv) + packed BN partial sums --------
    if has_proj:
        wscm = _prep_conv_w(wsc, Cp, Pp, cdt)[0]          # (Cp, Pp)
        gsp, bsp = jnp.pad(gsc, (0, Pp - P)), jnp.pad(bsc, (0, Pp - P))
        stA_shape = jax.ShapeDtypeStruct((nblk, 4, Pp), jnp.float32)
        stA_spec = pl.BlockSpec((1, 4, Pp), lambda i: (i, 0, 0))
        y1, ysc, stA = pl.pallas_call(
            functools.partial(_stage_a_proj_kernel, stride=s, L1=L1, Cp=Cp, Bn=Bn),
            grid=(nblk,),
            in_specs=[z_spec,
                      pl.BlockSpec((3, Cp, Pp), lambda i: (0, 0, 0)),
                      pl.BlockSpec((Cp, Pp), lambda i: (0, 0))],
            out_specs=[row_spec(), row_spec(), stA_spec],
            out_shape=[act_shape, act_shape, stA_shape],
            compiler_params=cparams,
            cost_estimate=pl.CostEstimate(
                flops=2 * R * Cp * Pp * 4, transcendentals=0,
                bytes_accessed=(z.size + w1m.size + wscm.size + 2 * R * Pp) * itm),
        )(z, w1m, wscm)
    else:
        stA_shape = jax.ShapeDtypeStruct((nblk, 2, Pp), jnp.float32)
        stA_spec = pl.BlockSpec((1, 2, Pp), lambda i: (i, 0, 0))
        y1, stA = pl.pallas_call(
            functools.partial(_stage_a_id_kernel, stride=s, L1=L1, Cp=Cp, Bn=Bn),
            grid=(nblk,),
            in_specs=[z_spec, pl.BlockSpec((3, Cp, Pp), lambda i: (0, 0, 0))],
            out_specs=[row_spec(), stA_spec],
            out_shape=[act_shape, stA_shape],
            compiler_params=cparams,
            cost_estimate=pl.CostEstimate(
                flops=2 * R * Cp * Pp * 3, transcendentals=0,
                bytes_accessed=(z.size + w1m.size + R * Pp) * itm),
        )(z, w1m)

    sc1, sh1 = _bn_affine(stA[:, 0], stA[:, 1], g1p, b1p, R)

    # ---- stage B: bn1+relu fused with conv2 + bn2 partial sums --------------
    stB_shape = jax.ShapeDtypeStruct((nblk, 2, Pp), jnp.float32)
    stB_spec = pl.BlockSpec((1, 2, Pp), lambda i: (i, 0, 0))
    y2, stB = pl.pallas_call(
        functools.partial(_stage_b_kernel, L1=L1, Rb=Rb, cdt=cdt),
        grid=(nblk,),
        in_specs=[row_spec(),
                  pl.BlockSpec((3, Pp, Pp), lambda i: (0, 0, 0)),
                  vec_spec(), vec_spec()],
        out_specs=[row_spec(), stB_spec],
        out_shape=[act_shape, stB_shape],
        compiler_params=cparams,
        cost_estimate=pl.CostEstimate(
            flops=2 * R * Pp * Pp * 3, transcendentals=0,
            bytes_accessed=(2 * R * Pp + w2m.size) * itm),
    )(y1, w2m, sc1, sh1)

    sc2, sh2 = _bn_affine(stB[:, 0], stB[:, 1], g2p, b2p, R)

    # ---- stage C: bn2 (+ shortcut bn) + residual add + relu -----------------
    out_shape = jax.ShapeDtypeStruct((R, Pp), jnp.float32)
    if has_proj:
        scs, shs = _bn_affine(stA[:, 2], stA[:, 3], gsp, bsp, R)
        out_p = pl.pallas_call(
            _stage_c_proj_kernel, grid=(nblk,),
            in_specs=[row_spec(), row_spec(),
                      vec_spec(), vec_spec(), vec_spec(), vec_spec()],
            out_specs=row_spec(),
            out_shape=out_shape,
            compiler_params=cparams,
        )(y2, ysc, sc2, sh2, scs, shs)
    else:
        assert Cp == Pp and L1 == L            # identity shortcut requirements
        x_flat = jnp.pad(jnp.transpose(x, (0, 2, 1)),
                         ((0, 0), (0, 0), (0, Pp - Cin))).reshape(R, Pp)
        out_p = pl.pallas_call(
            _stage_c_id_kernel, grid=(nblk,),
            in_specs=[row_spec(), row_spec(), vec_spec(), vec_spec()],
            out_specs=row_spec(),
            out_shape=out_shape,
            compiler_params=cparams,
        )(y2, x_flat, sc2, sh2)

    # TODO(synk): in a multi-block ResNet keep the output channels-last,
    # channel-padded and in compute dtype until network exit; the slice +
    # transpose below is the one-time exit epilogue for this standalone block.
    return jnp.transpose(out_p.reshape(N, L1, Pp)[:, :, :P], (0, 2, 1))


# ---------------------------------------------------------------------------
# Deterministic parameter init (shapes from BasicBlock.__init__)
# ---------------------------------------------------------------------------
def init_params(key, in_planes, planes, stride):
    k1, k2, k3 = jax.random.split(key, 3)
    w1 = 0.1 * jax.random.normal(k1, (planes, in_planes, 3), jnp.float32)
    w2 = 0.1 * jax.random.normal(k2, (planes, planes, 3), jnp.float32)
    g1, b1 = jnp.ones((planes,), jnp.float32), jnp.zeros((planes,), jnp.float32)
    g2, b2 = jnp.ones((planes,), jnp.float32), jnp.zeros((planes,), jnp.float32)
    if stride != 1 or in_planes != planes:
        wsc = 0.1 * jax.random.normal(k3, (planes, in_planes, 1), jnp.float32)
        gsc = jnp.ones((planes,), jnp.float32)
        bsc = jnp.zeros((planes,), jnp.float32)
    else:
        wsc = gsc = bsc = None
    return (w1, g1, b1, w2, g2, b2, wsc, gsc, bsc)


# ---------------------------------------------------------------------------
# Pure-JAX reference (mirrors the PyTorch forward, train-mode BN)
# ---------------------------------------------------------------------------
def reference_forward(x, params, stride):
    w1, g1, b1, w2, g2, b2, wsc, gsc, bsc = params

    def conv1d(x, w, s, pad):
        return lax.conv_general_dilated(
            x, w, (s,), [(pad, pad)], dimension_numbers=("NCH", "OIH", "NCH"))

    def bn(y, g, b):
        mean = jnp.mean(y, axis=(0, 2), keepdims=True)
        var = jnp.mean(jnp.square(y - mean), axis=(0, 2), keepdims=True)
        return (y - mean) * lax.rsqrt(var + EPS) * g.reshape(1, -1, 1) + b.reshape(1, -1, 1)

    out = jax.nn.relu(bn(conv1d(x, w1, stride, 1), g1, b1))
    out = bn(conv1d(out, w2, 1, 1), g2, b2)
    sc = bn(conv1d(x, wsc, stride, 0), gsc, bsc) if wsc is not None else x
    return jax.nn.relu(out + sc)


# ---------------------------------------------------------------------------
if __name__ == "__main__":
    key = jax.random.PRNGKey(0)
    kx, kp1, kp2 = jax.random.split(key, 3)

    # Case 1: projection shortcut (stride=2, in_planes != planes), f32 MXU path
    x = jax.random.normal(kx, (2, 4, 16), jnp.float32)        # (N, C_in, L)
    params = init_params(kp1, in_planes=4, planes=8, stride=2)
    ref = reference_forward(x, params, stride=2)
    out = jax.block_until_ready(
        basic_block_forward(x, params, stride=2, compute_dtype=jnp.float32))
    assert out.shape == (2, 8, 8), out.shape
    assert jnp.allclose(out, ref, rtol=1e-4, atol=1e-4), "projection block mismatch"

    # Case 2: identity shortcut (stride=1, in_planes == planes), f32 MXU path
    x2 = jax.random.normal(kx, (2, 8, 16), jnp.float32)
    params2 = init_params(kp2, in_planes=8, planes=8, stride=1)
    ref2 = reference_forward(x2, params2, stride=1)
    out2 = jax.block_until_ready(
        basic_block_forward(x2, params2, stride=1, compute_dtype=jnp.float32))
    assert out2.shape == (2, 8, 16), out2.shape
    assert jnp.allclose(out2, ref2, rtol=1e-4, atol=1e-4), "identity block mismatch"

    # Case 3: default bf16 MXU operands (fast path on v5e/v6e/v7x); BN in f32.
    out_bf = jax.block_until_ready(basic_block_forward(x, params, stride=2))
    assert out_bf.shape == (2, 8, 8), out_bf.shape
    assert jnp.allclose(out_bf, ref, rtol=1e-1, atol=1e-1), "bf16 block mismatch"

    print("KERNEL_OK")
</pallas_src>

<mosaic_0001>
module attributes {stable_mosaic.version = 11 : i64} {
  func.func @_stage_a_proj_kernel(%arg0: i32, %arg1: memref<1x9x256xf32, #tpu.memory_space<vmem>>, %arg2: memref<3x128x128xf32, #tpu.memory_space<vmem>>, %arg3: memref<128x128xf32, #tpu.memory_space<vmem>>, %arg4: memref<8x128xf32, #tpu.memory_space<vmem>>, %arg5: memref<8x128xf32, #tpu.memory_space<vmem>>, %arg6: memref<1x4x128xf32, #tpu.memory_space<vmem>>) attributes {dimension_semantics = [#tpu.dimension_semantics<parallel>], iteration_bounds = array<i64: 2>, scalar_prefetch = 0 : i64, scratch_operands = 0 : i64, tpu.core_type = #tpu.core_type<tc>, window_params = [{transform_indices = @transform_0, window_bounds = array<i64: 1, 9, 256>}, {pipeline_mode = #tpu.pipeline_mode<synchronous>, transform_indices = @transform_1, window_bounds = array<i64: 3, 128, 128>}, {pipeline_mode = #tpu.pipeline_mode<synchronous>, transform_indices = @transform_2, window_bounds = array<i64: 128, 128>}, {transform_indices = @transform_3, window_bounds = array<i64: 8, 128>}, {transform_indices = @transform_4, window_bounds = array<i64: 8, 128>}, {transform_indices = @transform_5, window_bounds = array<i64: 1, 4, 128>}]} {
    %c0 = arith.constant 0 : index
    %c0_0 = arith.constant 0 : index
    %c0_1 = arith.constant 0 : index
    %0 = vector.load %arg1[%c0, %c0_0, %c0_1] : memref<1x9x256xf32, #tpu.memory_space<vmem>>, vector<1x8x128xf32>
    %1 = vector.shape_cast %0 : vector<1x8x128xf32> to vector<8x128xf32>
    %c0_2 = arith.constant 0 : index
    %c0_3 = arith.constant 0 : index
    %c0_4 = arith.constant 0 : index
    %2 = vector.load %arg2[%c0_2, %c0_3, %c0_4] : memref<3x128x128xf32, #tpu.memory_space<vmem>>, vector<1x128x128xf32>
    %3 = vector.shape_cast %2 : vector<1x128x128xf32> to vector<128x128xf32>
    %cst = arith.constant dense<0.000000e+00> : vector<8x128xf32>
    %4 = tpu.matmul %1, %3, %cst {dimension_numbers = #tpu.dot_dimension_numbers<[1], [0], [0], [1], [0, 0, 1, 1], [], []>} : vector<8x128xf32>, vector<128x128xf32>, vector<8x128xf32> -> vector<8x128xf32>
    %c0_5 = arith.constant 0 : index
    %c0_6 = arith.constant 0 : index
    %c128 = arith.constant 128 : index
    %5 = vector.load %arg1[%c0_5, %c0_6, %c128] : memref<1x9x256xf32, #tpu.memory_space<vmem>>, vector<1x8x128xf32>
    %6 = vector.shape_cast %5 : vector<1x8x128xf32> to vector<8x128xf32>
    %c1 = arith.constant 1 : index
    %c0_7 = arith.constant 0 : index
    %c0_8 = arith.constant 0 : index
    %7 = vector.load %arg2[%c1, %c0_7, %c0_8] : memref<3x128x128xf32, #tpu.memory_space<vmem>>, vector<1x128x128xf32>
    %8 = vector.shape_cast %7 : vector<1x128x128xf32> to vector<128x128xf32>
    %cst_9 = arith.constant dense<0.000000e+00> : vector<8x128xf32>
    %9 = tpu.matmul %6, %8, %cst_9 {dimension_numbers = #tpu.dot_dimension_numbers<[1], [0], [0], [1], [0, 0, 1, 1], [], []>} : vector<8x128xf32>, vector<128x128xf32>, vector<8x128xf32> -> vector<8x128xf32>
    %10 = arith.addf %4, %9 : vector<8x128xf32>
    %c0_10 = arith.constant 0 : index
    %c1_11 = arith.constant 1 : index
    %c0_12 = arith.constant 0 : index
    %11 = vector.load %arg1[%c0_10, %c1_11, %c0_12] : memref<1x9x256xf32, #tpu.memory_space<vmem>>, vector<1x8x128xf32>
    %12 = vector.shape_cast %11 : vector<1x8x128xf32> to vector<8x128xf32>
    %c2 = arith.constant 2 : index
    %c0_13 = arith.constant 0 : index
    %c0_14 = arith.constant 0 : index
    %13 = vector.load %arg2[%c2, %c0_13, %c0_14] : memref<3x128x128xf32, #tpu.memory_space<vmem>>, vector<1x128x128xf32>
    %14 = vector.shape_cast %13 : vector<1x128x128xf32> to vector<128x128xf32>
    %cst_15 = arith.constant dense<0.000000e+00> : vector<8x128xf32>
    %15 = tpu.matmul %12, %14, %cst_15 {dimension_numbers = #tpu.dot_dimension_numbers<[1], [0], [0], [1], [0, 0, 1, 1], [], []>} : vector<8x128xf32>, vector<128x128xf32>, vector<8x128xf32> -> vector<8x128xf32>
    %16 = arith.addf %10, %15 : vector<8x128xf32>
    %c0_16 = arith.constant 0 : index
    %c0_17 = arith.constant 0 : index
    %c128_18 = arith.constant 128 : index
    %17 = vector.load %arg1[%c0_16, %c0_17, %c128_18] : memref<1x9x256xf32, #tpu.memory_space<vmem>>, vector<1x8x128xf32>
    %18 = vector.shape_cast %17 : vector<1x8x128xf32> to vector<8x128xf32>
    %c0_19 = arith.constant 0 : index
    %c0_20 = arith.constant 0 : index
    %19 = vector.load %arg3[%c0_19, %c0_20] : memref<128x128xf32, #tpu.memory_space<vmem>>, vector<128x128xf32>
    %cst_21 = arith.constant dense<0.000000e+00> : vector<8x128xf32>
    %20 = tpu.matmul %18, %19, %cst_21 {dimension_numbers = #tpu.dot_dimension_numbers<[1], [0], [0], [1], [0, 0, 1, 1], [], []>} : vector<8x128xf32>, vector<128x128xf32>, vector<8x128xf32> -> vector<8x128xf32>
    %c0_22 = arith.constant 0 : index
    %c0_23 = arith.constant 0 : index
    %21 = vector.load %arg4[%c0_22, %c0_23] : memref<8x128xf32, #tpu.memory_space<vmem>>, vector<8x128xf32>
    tpu.vector_store %arg4[%c0_22, %c0_23], %16 {strides = array<i32>} : memref<8x128xf32, #tpu.memory_space<vmem>>, vector<8x128xf32>,
    %c0_24 = arith.constant 0 : index
    %c0_25 = arith.constant 0 : index
    %22 = vector.load %arg5[%c0_24, %c0_25] : memref<8x128xf32, #tpu.memory_space<vmem>>, vector<8x128xf32>
    tpu.vector_store %arg5[%c0_24, %c0_25], %20 {strides = array<i32>} : memref<8x128xf32, #tpu.memory_space<vmem>>, vector<8x128xf32>,
    %cst_26 = arith.constant dense<0.000000e+00> : vector<128xf32>
    %23 = vector.multi_reduction <add>, %16, %cst_26 [0] : vector<8x128xf32> to vector<128xf32>
    %24 = vector.shape_cast %23 : vector<128xf32> to vector<1x128xf32>
    %25 = arith.mulf %16, %16 : vector<8x128xf32>
    %cst_27 = arith.constant dense<0.000000e+00> : vector<128xf32>
    %26 = vector.multi_reduction <add>, %25, %cst_27 [0] : vector<8x128xf32> to vector<128xf32>
    %27 = vector.shape_cast %26 : vector<128xf32> to vector<1x128xf32>
    %cst_28 = arith.constant dense<0.000000e+00> : vector<128xf32>
    %28 = vector.multi_reduction <add>, %20, %cst_28 [0] : vector<8x128xf32> to vector<128xf32>
    %29 = vector.shape_cast %28 : vector<128xf32> to vector<1x128xf32>
    %30 = arith.mulf %20, %20 : vector<8x128xf32>
    %cst_29 = arith.constant dense<0.000000e+00> : vector<128xf32>
    %31 = vector.multi_reduction <add>, %30, %cst_29 [0] : vector<8x128xf32> to vector<128xf32>
    %32 = vector.shape_cast %31 : vector<128xf32> to vector<1x128xf32>
    %33 = tpu.concatenate %24, %27, %29, %32 in 0 : vector<1x128xf32>, vector<1x128xf32>, vector<1x128xf32>, vector<1x128xf32> -> vector<4x128xf32>
    %c0_30 = arith.constant 0 : index
    %c0_31 = arith.constant 0 : index
    %c0_32 = arith.constant 0 : index
    %34 = vector.load %arg6[%c0_30, %c0_31, %c0_32] : memref<1x4x128xf32, #tpu.memory_space<vmem>>, vector<1x4x128xf32>
    %35 = vector.shape_cast %34 : vector<1x4x128xf32> to vector<4x128xf32>
    %36 = vector.shape_cast %33 : vector<4x128xf32> to vector<1x4x128xf32>
    tpu.vector_store %arg6[%c0_30, %c0_31, %c0_32], %36 {strides = array<i32>} : memref<1x4x128xf32, #tpu.memory_space<vmem>>, vector<1x4x128xf32>,
    return
  }
  func.func @transform_0(%arg0: i32) -> (i32, i32, i32) {
    %c0_i32 = arith.constant 0 : i32
    %c0_i32_0 = arith.constant 0 : i32
    %c0_i32_1 = arith.constant 0 : i32
    return %arg0, %c0_i32, %c0_i32_0 : i32, i32, i32
  }
  func.func @transform_1(%arg0: i32) -> (i32, i32, i32) {
    %c0_i32 = arith.constant 0 : i32
    %c0_i32_0 = arith.constant 0 : i32
    %c0_i32_1 = arith.constant 0 : i32
    %c0_i32_2 = arith.constant 0 : i32
    return %c0_i32, %c0_i32_0, %c0_i32_1 : i32, i32, i32
  }
  func.func @transform_2(%arg0: i32) -> (i32, i32) {
    %c0_i32 = arith.constant 0 : i32
    %c0_i32_0 = arith.constant 0 : i32
    %c0_i32_1 = arith.constant 0 : i32
    return %c0_i32, %c0_i32_0 : i32, i32
  }
  func.func @transform_3(%arg0: i32) -> (i32, i32) {
    %c0_i32 = arith.constant 0 : i32
    %c0_i32_0 = arith.constant 0 : i32
    return %arg0, %c0_i32 : i32, i32
  }
  func.func @transform_4(%arg0: i32) -> (i32, i32) {
    %c0_i32 = arith.constant 0 : i32
    %c0_i32_0 = arith.constant 0 : i32
    return %arg0, %c0_i32 : i32, i32
  }
  func.func @transform_5(%arg0: i32) -> (i32, i32, i32) {
    %c0_i32 = arith.constant 0 : i32
    %c0_i32_0 = arith.constant 0 : i32
    %c0_i32_1 = arith.constant 0 : i32
    return %arg0, %c0_i32, %c0_i32_0 : i32, i32, i32
  }
}

module attributes {stable_mosaic.version = 11 : i64} {
  func.func @_stage_b_kernel(%arg0: i32, %arg1: memref<8x128xf32, #tpu.memory_space<vmem>>, %arg2: memref<3x128x128xf32, #tpu.memory_space<vmem>>, %arg3: memref<1x128xf32, #tpu.memory_space<vmem>>, %arg4: memref<1x128xf32, #tpu.memory_space<vmem>>, %arg5: memref<8x128xf32, #tpu.memory_space<vmem>>, %arg6: memref<1x2x128xf32, #tpu.memory_space<vmem>>) attributes {dimension_semantics = [#tpu.dimension_semantics<parallel>], iteration_bounds = array<i64: 2>, scalar_prefetch = 0 : i64, scratch_operands = 0 : i64, tpu.core_type = #tpu.core_type<tc>, window_params = [{transform_indices = @transform_0, window_bounds = array<i64: 8, 128>}, {pipeline_mode = #tpu.pipeline_mode<synchronous>, transform_indices = @transform_1, window_bounds = array<i64: 3, 128, 128>}, {pipeline_mode = #tpu.pipeline_mode<synchronous>, transform_indices = @transform_2, window_bounds = array<i64: 1, 128>}, {pipeline_mode = #tpu.pipeline_mode<synchronous>, transform_indices = @transform_3, window_bounds = array<i64: 1, 128>}, {transform_indices = @transform_4, window_bounds = array<i64: 8, 128>}, {transform_indices = @transform_5, window_bounds = array<i64: 1, 2, 128>}]} {
    %c0 = arith.constant 0 : index
    %c0_0 = arith.constant 0 : index
    %0 = vector.load %arg1[%c0, %c0_0] : memref<8x128xf32, #tpu.memory_space<vmem>>, vector<8x128xf32>
    %c0_1 = arith.constant 0 : index
    %c0_2 = arith.constant 0 : index
    %1 = vector.load %arg3[%c0_1, %c0_2] : memref<1x128xf32, #tpu.memory_space<vmem>>, vector<1x128xf32>
    %2 = vector.broadcast %1 : vector<1x128xf32> to vector<8x128xf32>
    %3 = arith.mulf %0, %2 : vector<8x128xf32>
    %c0_3 = arith.constant 0 : index
    %c0_4 = arith.constant 0 : index
    %4 = vector.load %arg4[%c0_3, %c0_4] : memref<1x128xf32, #tpu.memory_space<vmem>>, vector<1x128xf32>
    %5 = vector.broadcast %4 : vector<1x128xf32> to vector<8x128xf32>
    %6 = arith.addf %3, %5 : vector<8x128xf32>
    %cst = arith.constant 0.000000e+00 : f32
    %7 = vector.broadcast %cst : f32 to vector<8x128xf32>
    %8 = arith.maximumf %6, %7 : vector<8x128xf32>
    %9 = tpu.iota {dimensions = array<i32: 0>} : vector<8x128xi32>
    %c8_i32 = arith.constant 8 : i32
    %c0_i32 = arith.constant 0 : i32
    %10 = arith.cmpi eq, %c8_i32, %c0_i32 : i32
    %c1_i32 = arith.constant 1 : i32
    %11 = arith.select %10, %c1_i32, %c8_i32 : i32
    %12 = vector.broadcast %11 : i32 to vector<8x128xi32>
    %13 = arith.remsi %9, %12 : vector<8x128xi32>
    %c0_i32_5 = arith.constant 0 : i32
    %14 = vector.broadcast %c0_i32_5 : i32 to vector<8x128xi32>
    %15 = arith.cmpi ne, %13, %14 : vector<8x128xi32>
    %c0_i32_6 = arith.constant 0 : i32
    %16 = vector.broadcast %c0_i32_6 : i32 to vector<8x128xi32>
    %17 = arith.cmpi slt, %13, %16 : vector<8x128xi32>
    %c0_i32_7 = arith.constant 0 : i32
    %18 = arith.cmpi slt, %11, %c0_i32_7 : i32
    %19 = vector.broadcast %18 : i1 to vector<8x128xi1>
    %20 = vector.broadcast %19 : vector<8x128xi1> to vector<8x128xi1>
    %21 = arith.xori %17, %20 : vector<8x128xi1>
    %22 = arith.andi %21, %15 : vector<8x128xi1>
    %23 = vector.broadcast %11 : i32 to vector<8x128xi32>
    %24 = arith.addi %13, %23 : vector<8x128xi32>
    %25 = arith.select %22, %24, %13 : vector<8x128xi1>, vector<8x128xi32>
    %c1 = arith.constant 1 : index
    %c0_8 = arith.constant 0 : index
    %c0_9 = arith.constant 0 : index
    %26 = vector.load %arg2[%c1, %c0_8, %c0_9] : memref<3x128x128xf32, #tpu.memory_space<vmem>>, vector<1x128x128xf32>
    %27 = vector.shape_cast %26 : vector<1x128x128xf32> to vector<128x128xf32>
    %cst_10 = arith.constant dense<0.000000e+00> : vector<8x128xf32>
    %28 = tpu.matmul %8, %27, %cst_10 {dimension_numbers = #tpu.dot_dimension_numbers<[1], [0], [0], [1], [0, 0, 1, 1], [], []>} : vector<8x128xf32>, vector<128x128xf32>, vector<8x128xf32> -> vector<8x128xf32>
    %c0_i32_11 = arith.constant 0 : i32
    %29 = vector.broadcast %c0_i32_11 : i32 to vector<8x128xi32>
    %30 = arith.cmpi eq, %25, %29 : vector<8x128xi32>
    %c1_i32_12 = arith.constant 1 : i32
    %31 = tpu.dynamic_rotate %8 by %c1_i32_12 dim 0 : vector<8x128xf32>, i32 -> vector<8x128xf32>
    %cst_13 = arith.constant 0.000000e+00 : f32
    %32 = vector.broadcast %cst_13 : f32 to vector<8x128xf32>
    %33 = arith.select %30, %32, %31 : vector<8x128xi1>, vector<8x128xf32>
    %c0_14 = arith.constant 0 : index
    %c0_15 = arith.constant 0 : index
    %c0_16 = arith.constant 0 : index
    %34 = vector.load %arg2[%c0_14, %c0_15, %c0_16] : memref<3x128x128xf32, #tpu.memory_space<vmem>>, vector<1x128x128xf32>
    %35 = vector.shape_cast %34 : vector<1x128x128xf32> to vector<128x128xf32>
    %cst_17 = arith.constant dense<0.000000e+00> : vector<8x128xf32>
    %36 = tpu.matmul %33, %35, %cst_17 {dimension_numbers = #tpu.dot_dimension_numbers<[1], [0], [0], [1], [0, 0, 1, 1], [], []>} : vector<8x128xf32>, vector<128x128xf32>, vector<8x128xf32> -> vector<8x128xf32>
    %37 = arith.addf %28, %36 : vector<8x128xf32>
    %c7_i32 = arith.constant 7 : i32
    %38 = vector.broadcast %c7_i32 : i32 to vector<8x128xi32>
    %39 = arith.cmpi eq, %25, %38 : vector<8x128xi32>
    %c7_i32_18 = arith.constant 7 : i32
    %40 = tpu.dynamic_rotate %8 by %c7_i32_18 dim 0 : vector<8x128xf32>, i32 -> vector<8x128xf32>
    %cst_19 = arith.constant 0.000000e+00 : f32
    %41 = vector.broadcast %cst_19 : f32 to vector<8x128xf32>
    %42 = arith.select %39, %41, %40 : vector<8x128xi1>, vector<8x128xf32>
    %c2 = arith.constant 2 : index
    %c0_20 = arith.constant 0 : index
    %c0_21 = arith.constant 0 : index
    %43 = vector.load %arg2[%c2, %c0_20, %c0_21] : memref<3x128x128xf32, #tpu.memory_space<vmem>>, vector<1x128x128xf32>
    %44 = vector.shape_cast %43 : vector<1x128x128xf32> to vector<128x128xf32>
    %cst_22 = arith.constant dense<0.000000e+00> : vector<8x128xf32>
    %45 = tpu.matmul %42, %44, %cst_22 {dimension_numbers = #tpu.dot_dimension_numbers<[1], [0], [0], [1], [0, 0, 1, 1], [], []>} : vector<8x128xf32>, vector<128x128xf32>, vector<8x128xf32> -> vector<8x128xf32>
    %46 = arith.addf %37, %45 : vector<8x128xf32>
    %c0_23 = arith.constant 0 : index
    %c0_24 = arith.constant 0 : index
    %47 = vector.load %arg5[%c0_23, %c0_24] : memref<8x128xf32, #tpu.memory_space<vmem>>, vector<8x128xf32>
    tpu.vector_store %arg5[%c0_23, %c0_24], %46 {strides = array<i32>} : memref<8x128xf32, #tpu.memory_space<vmem>>, vector<8x128xf32>,
    %cst_25 = arith.constant dense<0.000000e+00> : vector<128xf32>
    %48 = vector.multi_reduction <add>, %46, %cst_25 [0] : vector<8x128xf32> to vector<128xf32>
    %49 = vector.shape_cast %48 : vector<128xf32> to vector<1x128xf32>
    %50 = arith.mulf %46, %46 : vector<8x128xf32>
    %cst_26 = arith.constant dense<0.000000e+00> : vector<128xf32>
    %51 = vector.multi_reduction <add>, %50, %cst_26 [0] : vector<8x128xf32> to vector<128xf32>
    %52 = vector.shape_cast %51 : vector<128xf32> to vector<1x128xf32>
    %53 = tpu.concatenate %49, %52 in 0 : vector<1x128xf32>, vector<1x128xf32> -> vector<2x128xf32>
    %c0_27 = arith.constant 0 : index
    %c0_28 = arith.constant 0 : index
    %c0_29 = arith.constant 0 : index
    %54 = vector.load %arg6[%c0_27, %c0_28, %c0_29] : memref<1x2x128xf32, #tpu.memory_space<vmem>>, vector<1x2x128xf32>
    %55 = vector.shape_cast %54 : vector<1x2x128xf32> to vector<2x128xf32>
    %56 = vector.shape_cast %53 : vector<2x128xf32> to vector<1x2x128xf32>
    tpu.vector_store %arg6[%c0_27, %c0_28, %c0_29], %56 {strides = array<i32>} : memref<1x2x128xf32, #tpu.memory_space<vmem>>, vector<1x2x128xf32>,
    return
  }
  func.func @transform_0(%arg0: i32) -> (i32, i32) {
    %c0_i32 = arith.constant 0 : i32
    %c0_i32_0 = arith.constant 0 : i32
    return %arg0, %c0_i32 : i32, i32
  }
  func.func @transform_1(%arg0: i32) -> (i32, i32, i32) {
    %c0_i32 = arith.constant 0 : i32
    %c0_i32_0 = arith.constant 0 : i32
    %c0_i32_1 = arith.constant 0 : i32
    %c0_i32_2 = arith.constant 0 : i32
    return %c0_i32, %c0_i32_0, %c0_i32_1 : i32, i32, i32
  }
  func.func @transform_2(%arg0: i32) -> (i32, i32) {
    %c0_i32 = arith.constant 0 : i32
    %c0_i32_0 = arith.constant 0 : i32
    %c0_i32_1 = arith.constant 0 : i32
    return %c0_i32, %c0_i32_0 : i32, i32
  }
  func.func @transform_3(%arg0: i32) -> (i32, i32) {
    %c0_i32 = arith.constant 0 : i32
    %c0_i32_0 = arith.constant 0 : i32
    %c0_i32_1 = arith.constant 0 : i32
    return %c0_i32, %c0_i32_0 : i32, i32
  }
  func.func @transform_4(%arg0: i32) -> (i32, i32) {
    %c0_i32 = arith.constant 0 : i32
    %c0_i32_0 = arith.constant 0 : i32
    return %arg0, %c0_i32 : i32, i32
  }
  func.func @transform_5(%arg0: i32) -> (i32, i32, i32) {
    %c0_i32 = arith.constant 0 : i32
    %c0_i32_0 = arith.constant 0 : i32
    %c0_i32_1 = arith.constant 0 : i32
    return %arg0, %c0_i32, %c0_i32_0 : i32, i32, i32
  }
}

module attributes {stable_mosaic.version = 11 : i64} {
  func.func @_stage_c_proj_kernel(%arg0: i32, %arg1: memref<8x128xf32, #tpu.memory_space<vmem>>, %arg2: memref<8x128xf32, #tpu.memory_space<vmem>>, %arg3: memref<1x128xf32, #tpu.memory_space<vmem>>, %arg4: memref<1x128xf32, #tpu.memory_space<vmem>>, %arg5: memref<1x128xf32, #tpu.memory_space<vmem>>, %arg6: memref<1x128xf32, #tpu.memory_space<vmem>>, %arg7: memref<8x128xf32, #tpu.memory_space<vmem>>) attributes {dimension_semantics = [#tpu.dimension_semantics<parallel>], iteration_bounds = array<i64: 2>, scalar_prefetch = 0 : i64, scratch_operands = 0 : i64, tpu.core_type = #tpu.core_type<tc>, window_params = [{transform_indices = @transform_0, window_bounds = array<i64: 8, 128>}, {transform_indices = @transform_1, window_bounds = array<i64: 8, 128>}, {pipeline_mode = #tpu.pipeline_mode<synchronous>, transform_indices = @transform_2, window_bounds = array<i64: 1, 128>}, {pipeline_mode = #tpu.pipeline_mode<synchronous>, transform_indices = @transform_3, window_bounds = array<i64: 1, 128>}, {pipeline_mode = #tpu.pipeline_mode<synchronous>, transform_indices = @transform_4, window_bounds = array<i64: 1, 128>}, {pipeline_mode = #tpu.pipeline_mode<synchronous>, transform_indices = @transform_5, window_bounds = array<i64: 1, 128>}, {transform_indices = @transform_6, window_bounds = array<i64: 8, 128>}]} {
    %c0 = arith.constant 0 : index
    %c0_0 = arith.constant 0 : index
    %0 = vector.load %arg1[%c0, %c0_0] : memref<8x128xf32, #tpu.memory_space<vmem>>, vector<8x128xf32>
    %c0_1 = arith.constant 0 : index
    %c0_2 = arith.constant 0 : index
    %1 = vector.load %arg3[%c0_1, %c0_2] : memref<1x128xf32, #tpu.memory_space<vmem>>, vector<1x128xf32>
    %2 = vector.broadcast %1 : vector<1x128xf32> to vector<8x128xf32>
    %3 = arith.mulf %0, %2 : vector<8x128xf32>
    %c0_3 = arith.constant 0 : index
    %c0_4 = arith.constant 0 : index
    %4 = vector.load %arg4[%c0_3, %c0_4] : memref<1x128xf32, #tpu.memory_space<vmem>>, vector<1x128xf32>
    %5 = vector.broadcast %4 : vector<1x128xf32> to vector<8x128xf32>
    %6 = arith.addf %3, %5 : vector<8x128xf32>
    %c0_5 = arith.constant 0 : index
    %c0_6 = arith.constant 0 : index
    %7 = vector.load %arg2[%c0_5, %c0_6] : memref<8x128xf32, #tpu.memory_space<vmem>>, vector<8x128xf32>
    %c0_7 = arith.constant 0 : index
    %c0_8 = arith.constant 0 : index
    %8 = vector.load %arg5[%c0_7, %c0_8] : memref<1x128xf32, #tpu.memory_space<vmem>>, vector<1x128xf32>
    %9 = vector.broadcast %8 : vector<1x128xf32> to vector<8x128xf32>
    %10 = arith.mulf %7, %9 : vector<8x128xf32>
    %c0_9 = arith.constant 0 : index
    %c0_10 = arith.constant 0 : index
    %11 = vector.load %arg6[%c0_9, %c0_10] : memref<1x128xf32, #tpu.memory_space<vmem>>, vector<1x128xf32>
    %12 = vector.broadcast %11 : vector<1x128xf32> to vector<8x128xf32>
    %13 = arith.addf %10, %12 : vector<8x128xf32>
    %14 = arith.addf %6, %13 : vector<8x128xf32>
    %cst = arith.constant 0.000000e+00 : f32
    %15 = vector.broadcast %cst : f32 to vector<8x128xf32>
    %16 = arith.maximumf %14, %15 : vector<8x128xf32>
    %c0_11 = arith.constant 0 : index
    %c0_12 = arith.constant 0 : index
    %17 = vector.load %arg7[%c0_11, %c0_12] : memref<8x128xf32, #tpu.memory_space<vmem>>, vector<8x128xf32>
    tpu.vector_store %arg7[%c0_11, %c0_12], %16 {strides = array<i32>} : memref<8x128xf32, #tpu.memory_space<vmem>>, vector<8x128xf32>,
    return
  }
  func.func @transform_0(%arg0: i32) -> (i32, i32) {
    %c0_i32 = arith.constant 0 : i32
    %c0_i32_0 = arith.constant 0 : i32
    return %arg0, %c0_i32 : i32, i32
  }
  func.func @transform_1(%arg0: i32) -> (i32, i32) {
    %c0_i32 = arith.constant 0 : i32
    %c0_i32_0 = arith.constant 0 : i32
    return %arg0, %c0_i32 : i32, i32
  }
  func.func @transform_2(%arg0: i32) -> (i32, i32) {
    %c0_i32 = arith.constant 0 : i32
    %c0_i32_0 = arith.constant 0 : i32
    %c0_i32_1 = arith.constant 0 : i32
    return %c0_i32, %c0_i32_0 : i32, i32
  }
  func.func @transform_3(%arg0: i32) -> (i32, i32) {
    %c0_i32 = arith.constant 0 : i32
    %c0_i32_0 = arith.constant 0 : i32
    %c0_i32_1 = arith.constant 0 : i32
    return %c0_i32, %c0_i32_0 : i32, i32
  }
  func.func @transform_4(%arg0: i32) -> (i32, i32) {
    %c0_i32 = arith.constant 0 : i32
    %c0_i32_0 = arith.constant 0 : i32
    %c0_i32_1 = arith.constant 0 : i32
    return %c0_i32, %c0_i32_0 : i32, i32
  }
  func.func @transform_5(%arg0: i32) -> (i32, i32) {
    %c0_i32 = arith.constant 0 : i32
    %c0_i32_0 = arith.constant 0 : i32
    %c0_i32_1 = arith.constant 0 : i32
    return %c0_i32, %c0_i32_0 : i32, i32
  }
  func.func @transform_6(%arg0: i32) -> (i32, i32) {
    %c0_i32 = arith.constant 0 : i32
    %c0_i32_0 = arith.constant 0 : i32
    return %arg0, %c0_i32 : i32, i32
  }
}

</mosaic_0001>

<bundles_post_ra>
// kernel: basic_block_forward.5
= control target key start
LH: loop header
LB: loop body
LE: loop exit
PB: predicated region body
PF: predicated region fallthrough
CT: control target
= control target key end

     0   :  { %s431_s21 = smov 0   ;;  %s457_s0 = inlined_call_operand.vmem [shape: f32[16,128], index: 0, kind: input, shape index: {}]   ;;  %s458_s1 = inlined_call_operand.vmem [shape: f32[16,128], index: 1, kind: input, shape index: {}]   ;;  %s459_s2 = inlined_call_operand.vmem [shape: f32[1,128], index: 2, kind: input, shape index: {}]   ;;  %s460_s3 = inlined_call_operand.vmem [shape: f32[1,128], index: 3, kind: input, shape index: {}]   ;;  %s461_s4 = inlined_call_operand.vmem [shape: f32[1,128], index: 4, kind: input, shape index: {}]   ;;  %s462_s5 = inlined_call_operand.vmem [shape: f32[1,128], index: 5, kind: input, shape index: {}]   ;;  %s463_s6 = inlined_call_operand.vmem [shape: f32[16,128], index: 6, kind: output, shape index: {}]  }
   0x1 LB: > { %s366_s22 = sadd.s32 4294967295, %s394_s21   ;;  %p370_p0 = scmp.ge.s32.totalorder %s394_s21, 1  ;;  %s394_s21 = sphi %s431_s21, %s16_s21  }
   0x2   : > { %p220_p1 = scmp.lt.s32.totalorder %s394_s21, 3 }
   0x4   : > { %p221_p2 = pnand %p370_p0, %p220_p1 }
   0x5   : > { %p252_p3 = scmp.lt.s32.totalorder (!%p221_p2), %s366_s22, 1  ;;  %v374_v0 = vld [vmem:[%s459_s2] ss:$0 sm:$0xff] (!%p221_p2) }
   0x6   : > { %224 = sbr.rel (%p221_p2) target bundleno = 27 (0x1b), region = 44  ;;  %v376_v1 = vld [vmem:[%s461_s4] ss:$0 sm:$0xff] (!%p221_p2) }
   0x7   : > { %v375_v2 = vld [vmem:[%s460_s3] ss:$0 sm:$0xff] (!%p221_p2) }
   0x8   : > { %v377_v5 = vld [vmem:[%s462_s5] ss:$0 sm:$0xff] (!%p221_p2) }
   0xd   : > { %s465_s22 = smov (!%p252_p3, %s366_s22), 1 }
   0xe   : > { %s371_s23 = sshll.u32 %s465_s22, 3 }
   0xf   : > { %s255_s30 = scalar_lea.vmem %s457_s0, %s371_s23  ;;  %s259_s9 = scalar_lea.vmem %s458_s1, %s371_s23 }
  0x10   : > { %v264_v3 = vld [vmem:[%s255_s30] sm:$0xff]  ;;  %s263_s16 = scalar_lea.vmem %s463_s6, %s371_s23 }
  0x11   : > { %v281_v4 = vld [vmem:[%s259_s9] sm:$0xff]  ;;  %v272_v6 = vmul.f32 %v374_v0, %v264_v3 }
  0x12   : > { %v289_v7 = vmul.f32 %v376_v1, %v281_v4 }
  0x13   : > { %v280_v8 = vadd.f32 %v375_v2, %v272_v6 }
  0x14   : > { %v297_v9 = vadd.f32 %v377_v5, %v289_v7 }
  0x16   : > { %v298_v10 = vadd.f32 %v297_v9, %v280_v8 }
  0x18   : > { %v299_v11 = vmax.f32 %v298_v10, 0.0 }
  0x1a   : > { %300 = vst [vmem:[%s263_s16] sm:$0xff] %v299_v11 }
  0x1b PF: > { %s16_s21 = sadd.s32 1, %s394_s21  }
  0x1c   : > { %p13_p4 = scmp.ge.s32.totalorder %s16_s21, 4  }
  0x1e   :  { %15 = sbr.rel (!%p13_p4) target bundleno = 1 (0x1), region = 77 }

// kernel: basic_block_forward.4
= control target key start
LH: loop header
LB: loop body
LE: loop exit
PB: predicated region body
PF: predicated region fallthrough
CT: control target
= control target key end

     0   :  { %s964_s18 = smov 0   ;;  %s1176_s0 = inlined_call_operand.vmem [shape: f32[16,128], index: 0, kind: input, shape index: {}]   ;;  %s1177_s1 = inlined_call_operand.vmem [shape: f32[3,128,128], index: 1, kind: input, shape index: {}]   ;;  %s1178_s2 = inlined_call_operand.vmem [shape: f32[1,128], index: 2, kind: input, shape index: {}]   ;;  %s1179_s3 = inlined_call_operand.vmem [shape: f32[1,128], index: 3, kind: input, shape index: {}]   ;;  %s1180_s4 = inlined_call_operand.vmem [shape: f32[16,128], index: 4, kind: output, shape index: {0}]   ;;  %s1181_s5 = inlined_call_operand.vmem [shape: f32[2,2,128], index: 5, kind: output, shape index: {1}]  }
   0x1 LB: > { %s631_s19 = sadd.s32 4294967295, %s929_s18   ;;  %p635_p0 = scmp.ge.s32.totalorder %s929_s18, 1  ;;  %s929_s18 = sphi %s964_s18, %s16_s18  }
   0x2   : > { %p189_p1 = scmp.lt.s32.totalorder %s929_s18, 3 }
   0x4   : > { %p190_p2 = pnand %p635_p0, %p189_p1 }
   0x5   : > { %v641_v0 = vld [vmem:[%s1177_s1 + $0x80] sm:$0xff] (!%p190_p2)  ;;  %v642_v1 = vld [vmem:[%s1177_s1 + $0x88] sm:$0xff] (!%p190_p2)  ;;  %v643_v2 = vld [vmem:[%s1177_s1 + $0x90] sm:$0xff] (!%p190_p2)  ;;  %v931_v3 = vmov (!%p190_p2), 0.0|0.0   ;;  %vm932_vm0 = vmmov (!%p190_p2), 0   ;;  %v933_v6 = vmov (!%p190_p2), 0.0   ;;  %v249_v47 = vlaneseq (!%p190_p2) }
   0x6   : > { %193 = sbr.rel (%p190_p2) target bundleno = 301 (0x12d), region = 36  ;;  %861 = vmatprep.subr.bf16.mxu0 (!%p190_p2), %v931_v3  ;;  %v862_v4 = vpack.c.bf16 (!%p190_p2), %v642_v1, %v641_v0  ;;  %v644_v5 = vld [vmem:[%s1177_s1 + $0x98] sm:$0xff] (!%p190_p2)  ;;  %837 = vmatprep.subr.bf16.mxu1 (!%p190_p2), %v931_v3  ;;  %v645_v8 = vld [vmem:[%s1177_s1 + $0xa0] sm:$0xff] (!%p190_p2)  ;;  %v646_v9 = vld [vmem:[%s1177_s1 + $0xa8] sm:$0xff] (!%p190_p2)  ;;  %p219_p3 = scmp.lt.s32.totalorder (!%p190_p2), %s631_s19, 1  ;;  %vm544_vm3 = vcmask (!%p190_p2), 1040384  }
   0x7   : > { %799 = vmatprep.mubr.msk.f32.mxu0 (!%p190_p2), %vm932_vm0, %v933_v6  ;;  %764 = vmatprep.mubr.msk.f32.mxu1 (!%p190_p2), %vm932_vm0, %v933_v6  ;;  %v865_v7 = vpack.c.bf16 (!%p190_p2), %v644_v5, %v643_v2  ;;  %v283_v10 = vld [vmem:[%s1177_s1] sm:$0xff] (!%p190_p2)  ;;  %v284_v11 = vld [vmem:[%s1177_s1 + $0x8] sm:$0xff] (!%p190_p2)  ;;  %v868_v13 = vpack.c.bf16 (!%p190_p2), %v646_v9, %v645_v8  ;;  %v285_v14 = vld [vmem:[%s1177_s1 + $0x10] sm:$0xff] (!%p190_p2)  ;;  %v250_v55 = vshrl.u32 (!%p190_p2), %v249_v47, 7 }
   0x8   : > { %863 = vmatpush3.bf16.msra.mxu0 (!%p190_p2), %v862_v4  ;;  %v838_v12 = vpack.c.bf16 (!%p190_p2), %v284_v11, %v283_v10  ;;  %v647_v15 = vld [vmem:[%s1177_s1 + $0xb0] sm:$0xff] (!%p190_p2)  ;;  %v648_v16 = vld [vmem:[%s1177_s1 + $0xb8] sm:$0xff] (!%p190_p2)  ;;  %v287_v19 = vld [vmem:[%s1177_s1 + $0x20] sm:$0xff] (!%p190_p2) }
   0x9   : > { %864 = vmatprep.subr.bf16.mxu0 (!%p190_p2), %v931_v3  ;;  %v286_v17 = vld [vmem:[%s1177_s1 + $0x18] sm:$0xff] (!%p190_p2)  ;;  %v288_v20 = vld [vmem:[%s1177_s1 + $0x28] sm:$0xff] (!%p190_p2)  ;;  %v871_v21 = vpack.c.bf16 (!%p190_p2), %v648_v16, %v647_v15  ;;  %v649_v22 = vld [vmem:[%s1177_s1 + $0xc0] sm:$0xff] (!%p190_p2)  ;;  %v255_v63 = vand.u32 (!%p190_p2), 7, %v250_v55 }
   0xa   : > { %839 = vmatpush3.bf16.msra.mxu1 (!%p190_p2), %v838_v12  ;;  %v841_v18 = vpack.c.bf16 (!%p190_p2), %v286_v17, %v285_v14  ;;  %v650_v23 = vld [vmem:[%s1177_s1 + $0xc8] sm:$0xff] (!%p190_p2)  ;;  %v844_v24 = vpack.c.bf16 (!%p190_p2), %v288_v20, %v287_v19  ;;  %v289_v25 = vld [vmem:[%s1177_s1 + $0x30] sm:$0xff] (!%p190_p2)  ;;  %v290_v26 = vld [vmem:[%s1177_s1 + $0x38] sm:$0xff] (!%p190_p2) }
   0xb   : > { %840 = vmatprep.subr.bf16.mxu1 (!%p190_p2), %v931_v3  ;;  %v874_v27 = vpack.c.bf16 (!%p190_p2), %v650_v23, %v649_v22  ;;  %v651_v28 = vld [vmem:[%s1177_s1 + $0xd0] sm:$0xff] (!%p190_p2)  ;;  %v652_v29 = vld [vmem:[%s1177_s1 + $0xd8] sm:$0xff] (!%p190_p2)  ;;  %v847_v30 = vpack.c.bf16 (!%p190_p2), %v290_v26, %v289_v25  ;;  %v291_v31 = vld [vmem:[%s1177_s1 + $0x40] sm:$0xff] (!%p190_p2)  ;;  %vm679_vm1 = vcmp.ne.s32.totalorder (!%p190_p2), %v255_v63, 0  ;;  %vm680_vm2 = vcmp.ne.s32.totalorder (!%p190_p2), %v255_v63, 7 }
   0xc   : > { %866 = vmatpush3.bf16.msra.mxu0 (!%p190_p2), %v865_v7  ;;  %v292_v32 = vld [vmem:[%s1177_s1 + $0x48] sm:$0xff] (!%p190_p2)  ;;  %v877_v33 = vpack.c.bf16 (!%p190_p2), %v652_v29, %v651_v28  ;;  %v639_v35 = vld [vmem:[%s1178_s2] ss:$0 sm:$0xff] (!%p190_p2)  ;;  %v293_v39 = vld [vmem:[%s1177_s1 + $0x50] sm:$0xff] (!%p190_p2) }
   0xd   : > { %867 = vmatprep.subr.bf16.mxu0 %v931_v3  ;;  %s1183_s19 = smov (!%p219_p3, %s631_s19), 1  ;;  %v653_v36 = vld [vmem:[%s1177_s1 + $0xe0] sm:$0xff]  ;;  %v654_v37 = vld [vmem:[%s1177_s1 + $0xe8] sm:$0xff]  ;;  %v850_v38 = vpack.c.bf16 %v292_v32, %v291_v31  ;;  %v294_v40 = vld [vmem:[%s1177_s1 + $0x58] sm:$0xff] }
   0xe   : > { %842 = vmatpush3.bf16.msra.mxu1 %v841_v18  ;;  %s636_s29 = sshll.u32 %s1183_s19, 3  ;;  %v880_v42 = vpack.c.bf16 %v654_v37, %v653_v36  ;;  %v640_v43 = vld [vmem:[%s1179_s3] ss:$0 sm:$0xff]  ;;  %v655_v44 = vld [vmem:[%s1177_s1 + $0xf0] sm:$0xff]  ;;  %v656_v45 = vld [vmem:[%s1177_s1 + $0xf8] sm:$0xff]  ;;  %v853_v46 = vpack.c.bf16 %v294_v40, %v293_v39  ;;  %s638_s13 = sshll.u32 %s1183_s19, 1 }
   0xf   : > { %843 = vmatprep.subr.bf16.mxu1 %v931_v3  ;;  %s222_s15 = scalar_lea.vmem %s1176_s0, %s636_s29  ;;  %v295_v48 = vld [vmem:[%s1177_s1 + $0x60] sm:$0xff]  ;;  %v296_v49 = vld [vmem:[%s1177_s1 + $0x68] sm:$0xff]  ;;  %v883_v51 = vpack.c.bf16 %v656_v45, %v655_v44  ;;  %v297_v56 = vld [vmem:[%s1177_s1 + $0x70] sm:$0xff]  ;;  %s226_s12 = scalar_lea.vmem %s1180_s4, %s636_s29 }
  0x10   : > { %869 = vmatpush3.bf16.msra.mxu0 %v868_v13  ;;  %v231_v34 = vld [vmem:[%s222_s15] sm:$0xff]  ;;  %v660_v53 = vld [vmem:[%s1177_s1 + $0x108] sm:$0xff]  ;;  %v856_v54 = vpack.c.bf16 %v296_v49, %v295_v48  ;;  %v298_v57 = vld [vmem:[%s1177_s1 + $0x78] sm:$0xff]  ;;  %s230_s29 = scalar_lea.vmem %s1181_s5, %s638_s13 }
  0x11   : > { %870 = vmatprep.subr.bf16.mxu0 %v931_v3  ;;  %v239_v41 = vmul.f32 %v639_v35, %v231_v34  ;;  %v659_v52 = vld [vmem:[%s1177_s1 + $0x100] sm:$0xff]  ;;  %v661_v60 = vld [vmem:[%s1177_s1 + $0x110] sm:$0xff]  ;;  %v662_v61 = vld [vmem:[%s1177_s1 + $0x118] sm:$0xff]  ;;  %v859_v62 = vpack.c.bf16 %v298_v57, %v297_v56 }
  0x12   : > { %845 = vmatpush3.bf16.msra.mxu1 %v844_v24  ;;  %v886_v59 = vpack.c.bf16 %v660_v53, %v659_v52  ;;  %v889_v0 = vpack.c.bf16 %v662_v61, %v661_v60  ;;  %v663_v2 = vld [vmem:[%s1177_s1 + $0x120] sm:$0xff]  ;;  %v664_v4 = vld [vmem:[%s1177_s1 + $0x128] sm:$0xff]  ;;  %v666_v7 = vld [vmem:[%s1177_s1 + $0x138] sm:$0xff] }
  0x13   : > { %846 = vmatprep.subr.bf16.mxu1 %v931_v3  ;;  %v247_v50 = vadd.f32 %v640_v43, %v239_v41  ;;  %v892_v5 = vpack.c.bf16 %v664_v4, %v663_v2  ;;  %v667_v9 = vld [vmem:[%s1177_s1 + $0x140] sm:$0xff]  ;;  %v668_v10 = vld [vmem:[%s1177_s1 + $0x148] sm:$0xff]  ;;  %v669_v12 = vld [vmem:[%s1177_s1 + $0x150] sm:$0xff] }
  0x14   : > { %872 = vmatpush3.bf16.msra.mxu0 %v871_v21  ;;  %v898_v11 = vpack.c.bf16 %v668_v10, %v667_v9  ;;  %v670_v13 = vld [vmem:[%s1177_s1 + $0x158] sm:$0xff]  ;;  %v671_v15 = vld [vmem:[%s1177_s1 + $0x160] sm:$0xff]  ;;  %v672_v16 = vld [vmem:[%s1177_s1 + $0x168] sm:$0xff] }
  0x15   : > { %873 = vmatprep.subr.bf16.mxu0 %v931_v3  ;;  %v248_v58 = vmax.f32 %v247_v50, 0.0  ;;  %v901_v14 = vpack.c.bf16 %v670_v13, %v669_v12  ;;  %v904_v17 = vpack.c.bf16 %v672_v16, %v671_v15  ;;  %v673_v18 = vld [vmem:[%s1177_s1 + $0x170] sm:$0xff]  ;;  %v674_v19 = vld [vmem:[%s1177_s1 + $0x178] sm:$0xff] }
  0x16   : > { %848 = vmatpush3.bf16.msra.mxu1 %v847_v30  ;;  %v907_v20 = vpack.c.bf16 %v674_v19, %v673_v18 }
  0x17   : > { %849 = vmatprep.subr.bf16.mxu1 %v931_v3  ;;  %v281_v1 = vrot.slane %v248_v58, 7  ;;  %v440_v21 = vrot.slane %v248_v58, 1 }
  0x18   : > { %875 = vmatpush3.bf16.msra.mxu0 %v874_v27 }
  0x19   : > { %876 = vmatprep.subr.bf16.mxu0 %v931_v3 }
  0x1a   : > { %851 = vmatpush3.bf16.msra.mxu1 %v850_v38 }
  0x1b   : > { %852 = vmatprep.subr.bf16.mxu1 %v931_v3 }
  0x1c   : > { %878 = vmatpush3.bf16.msra.mxu0 %v877_v33 }
  0x1d   : > { %879 = vmatprep.subr.bf16.mxu0 %v931_v3 }
  0x1e   : > { %854 = vmatpush3.bf16.msra.mxu1 %v853_v46 }
  0x1f   : > { %855 = vmatprep.subr.bf16.mxu1 %v931_v3 }
  0x20   : > { %881 = vmatpush3.bf16.msra.mxu0 %v880_v42 }
  0x21   : > { %882 = vmatprep.subr.bf16.mxu0 %v931_v3 }
  0x22   : > { %857 = vmatpush3.bf16.msra.mxu1 %v856_v54 }
  0x23   : > { %858 = vmatprep.subr.bf16.mxu1 %v931_v3 }
  0x24   : > { %884 = vmatpush3.bf16.msra.mxu0 %v883_v51 }
  0x25   : > { %885 = vmatprep.subr.bf16.mxu0 %v931_v3 }
  0x26   : > { %860 = vmatpush3.bf16.msra.mxu1 %v859_v62 }
  0x27   : > { %800 = vmatmul.mubr.f32.vlgmr.msra.gmra.mrb[0].mxu0 %v248_v58 }
  0x28   : > { %887 = vmatpush3.bf16.msra.mxu0 %v886_v59  ;;  %834 = vmatprep.mubr.msk.f32.mxu0 %vm932_vm0, %v933_v6  ;;  %v665_v6 = vld [vmem:[%s1177_s1 + $0x130] sm:$0xff] }
  0x29   : > { %888 = vmatprep.subr.bf16.mxu0 %v931_v3  ;;  %765 = vmatmul.mubr.msk.f32.vlgmr.msra.gmra.mrb[0].mxu1 %vm679_vm1, %v281_v1  ;;  %v895_v8 = vpack.c.bf16 %v666_v7, %v665_v6 }
  0x2c   : > { %890 = vmatpush3.bf16.msra.mxu0 %v889_v0 }
  0x2d   : > { %891 = vmatprep.subr.bf16.mxu0 %v931_v3 }
  0x30   : > { %893 = vmatpush3.bf16.msra.mxu0 %v892_v5 }
  0x31   : > { %894 = vmatprep.subr.bf16.mxu0 %v931_v3 }
  0x34   : > { %896 = vmatpush3.bf16.msra.mxu0 %v895_v8 }
  0x35   : > { %897 = vmatprep.subr.bf16.mxu0 %v931_v3 }
  0x38   : > { %899 = vmatpush3.bf16.msra.mxu0 %v898_v11 }
  0x39   : > { %900 = vmatprep.subr.bf16.mxu0 %v931_v3 }
  0x3c   : > { %902 = vmatpush3.bf16.msra.mxu0 %v901_v14 }
  0x3d   : > { %903 = vmatprep.subr.bf16.mxu0 %v931_v3 }
  0x40   : > { %905 = vmatpush3.bf16.msra.mxu0 %v904_v17 }
  0x41   : > { %906 = vmatprep.subr.bf16.mxu0 %v931_v3 }
  0x44   : > { %908 = vmatpush3.bf16.msra.mxu0 %v907_v20 }
  0x47   : > { %835 = vmatmul.mubr.msk.f32.vlgmr.msra.gmra.mrb[0].mxu0 %vm680_vm2, %v440_v21 }
  0xfc   : > { %v365_v22 = vpop.f32.mrb[0].mxu1 }
  0xfd   : > { %v766_v23 = vpop.f32.mrb[1].mxu1 }
 0x11a   : > { %v525_v24 = vpop.f32.mrb[0].mxu0 }
 0x11b   : > { %v909_v25 = vadd.f32 %v525_v24, %v365_v22  ;;  %v836_v26 = vpop.f32.mrb[1].mxu0 }
 0x11d   : > { %530 = vst [vmem:[%s226_s12] sm:$0xff] %v909_v25  ;;  %v531_v27 = vrot.slane %v909_v25, 4  ;;  %v537_v28 = vmul.f32 %v909_v25, %v909_v25 }
 0x11f   : > { %v532_v29 = vadd.f32 %v909_v25, %v531_v27  ;;  %v538_v3 = vrot.slane %v537_v28, 4 }
 0x121   : > { %v533_v30 = vrot.slane %v532_v29, 2  ;;  %v539_v31 = vadd.f32 %v538_v3, %v537_v28 }
 0x123   : > { %v534_v32 = vadd.f32 %v533_v30, %v532_v29  ;;  %v540_v33 = vrot.slane %v539_v31, 2 }
 0x125   : > { %v535_v34 = vrot.slane %v534_v32, 1  ;;  %v541_v35 = vadd.f32 %v540_v33, %v539_v31 }
 0x127   : > { %v542_v36 = vrot.slane %v541_v35, 1  ;;  %v536_v37 = vadd.f32 %v535_v34, %v534_v32 }
 0x129   : > { %v543_v38 = vadd.f32 %v542_v36, %v541_v35 }
 0x12b   : > { %v545_v39 = vsel %vm544_vm3, %v536_v37, %v543_v38 }
 0x12c   : > { %546 = vst [vmem:[%s230_s29] sm:$0x3] %v545_v39 }
 0x12d PF: > { %s16_s18 = sadd.s32 1, %s929_s18  }
 0x12e   : > { %p13_p4 = scmp.ge.s32.totalorder %s16_s18, 4  }
 0x130   :  { %15 = sbr.rel (!%p13_p4) target bundleno = 1 (0x1), region = 80 }

// kernel: basic_block_forward.3
= control target key start
LH: loop header
LB: loop body
LE: loop exit
PB: predicated region body
PF: predicated region fallthrough
CT: control target
= control target key end

     0   :  { %s1156_s18 = smov 0   ;;  %s1430_s0 = inlined_call_operand.vmem [shape: f32[2,9,256], index: 0, kind: input, shape index: {}]   ;;  %s1431_s1 = inlined_call_operand.vmem [shape: f32[3,128,128], index: 1, kind: input, shape index: {}]   ;;  %s1432_s2 = inlined_call_operand.vmem [shape: f32[128,128], index: 2, kind: input, shape index: {}]   ;;  %s1433_s3 = inlined_call_operand.vmem [shape: f32[16,128], index: 3, kind: output, shape index: {0}]   ;;  %s1434_s4 = inlined_call_operand.vmem [shape: f32[16,128], index: 4, kind: output, shape index: {1}]   ;;  %s1435_s5 = inlined_call_operand.vmem [shape: f32[2,4,128], index: 5, kind: output, shape index: {2}]  }
   0x1 LB: > { %s752_s19 = sadd.s32 4294967295, %s1121_s18   ;;  %p756_p0 = scmp.ge.s32.totalorder %s1121_s18, 1  ;;  %s1121_s18 = sphi %s1156_s18, %s16_s18  }
   0x2   : > { %p192_p1 = scmp.lt.s32.totalorder %s1121_s18, 3 }
   0x4   : > { %p193_p2 = pnand %p756_p0, %p192_p1 }
   0x5   : > { %v762_v0 = vld [vmem:[%s1431_s1 + $0x80] sm:$0xff] (!%p193_p2)  ;;  %v763_v1 = vld [vmem:[%s1431_s1 + $0x88] sm:$0xff] (!%p193_p2)  ;;  %v1123_v3 = vmov (!%p193_p2), 0.0|0.0   ;;  %v764_v6 = vld [vmem:[%s1431_s1 + $0x90] sm:$0xff] (!%p193_p2)  ;;  %vm1124_vm0 = vmmov (!%p193_p2), 0   ;;  %v1125_v11 = vmov (!%p193_p2), 0.0  }
   0x6   : > { %196 = sbr.rel (%p193_p2) target bundleno = 304 (0x130), region = 32  ;;  %v245_v2 = vld [vmem:[%s1431_s1] sm:$0xff] (!%p193_p2)  ;;  %1005 = vmatprep.subr.bf16.mxu1 (!%p193_p2), %v1123_v3  ;;  %1029 = vmatprep.subr.bf16.mxu0 (!%p193_p2), %v1123_v3  ;;  %v1006_v4 = vpack.c.bf16 (!%p193_p2), %v763_v1, %v762_v0  ;;  %v246_v5 = vld [vmem:[%s1431_s1 + $0x8] sm:$0xff] (!%p193_p2)  ;;  %v765_v7 = vld [vmem:[%s1431_s1 + $0x98] sm:$0xff] (!%p193_p2)  ;;  %p227_p3 = scmp.lt.s32.totalorder (!%p193_p2), %s752_s19, 1  ;;  %vm440_vm1 = vcmask (!%p193_p2), 1046528  }
   0x7   : > { %v1030_v8 = vpack.c.bf16 (!%p193_p2), %v246_v5, %v245_v2  ;;  %v247_v9 = vld [vmem:[%s1431_s1 + $0x10] sm:$0xff] (!%p193_p2)  ;;  %v248_v10 = vld [vmem:[%s1431_s1 + $0x18] sm:$0xff] (!%p193_p2)  ;;  %897 = vmatprep.mubr.msk.f32.mxu1 (!%p193_p2), %vm1124_vm0, %v1125_v11  ;;  %932 = vmatprep.mubr.msk.f32.mxu0 (!%p193_p2), %vm1124_vm0, %v1125_v11  ;;  %v1009_v12 = vpack.c.bf16 (!%p193_p2), %v765_v7, %v764_v6  ;;  %v766_v14 = vld [vmem:[%s1431_s1 + $0xa0] sm:$0xff] (!%p193_p2)  ;;  %vm630_vm2 = vcmask (!%p193_p2), 1040384   ;;  %vm632_vm3 = vcmask (!%p193_p2), 1041408  }
   0x8   : > { %1007 = vmatpush3.bf16.msra.mxu1 (!%p193_p2), %v1006_v4  ;;  %v1033_v13 = vpack.c.bf16 (!%p193_p2), %v248_v10, %v247_v9  ;;  %v767_v15 = vld [vmem:[%s1431_s1 + $0xa8] sm:$0xff] (!%p193_p2)  ;;  %v249_v16 = vld [vmem:[%s1431_s1 + $0x20] sm:$0xff] (!%p193_p2)  ;;  %v768_v20 = vld [vmem:[%s1431_s1 + $0xb0] sm:$0xff] (!%p193_p2)  ;;  %vm634_vm4 = vcmask (!%p193_p2), 1042432  }
   0x9   : > { %1031 = vmatpush3.bf16.msra.mxu0 (!%p193_p2), %v1030_v8  ;;  %1008 = vmatprep.subr.bf16.mxu1 (!%p193_p2), %v1123_v3  ;;  %v250_v17 = vld [vmem:[%s1431_s1 + $0x28] sm:$0xff] (!%p193_p2)  ;;  %v1012_v18 = vpack.c.bf16 (!%p193_p2), %v767_v15, %v766_v14  ;;  %v769_v21 = vld [vmem:[%s1431_s1 + $0xb8] sm:$0xff] (!%p193_p2)  ;;  %v251_v22 = vld [vmem:[%s1431_s1 + $0x30] sm:$0xff] (!%p193_p2) }
   0xa   : > { %1032 = vmatprep.subr.bf16.mxu0 (!%p193_p2), %v1123_v3  ;;  %v1036_v19 = vpack.c.bf16 (!%p193_p2), %v250_v17, %v249_v16  ;;  %v252_v23 = vld [vmem:[%s1431_s1 + $0x38] sm:$0xff] (!%p193_p2)  ;;  %v1015_v24 = vpack.c.bf16 (!%p193_p2), %v769_v21, %v768_v20  ;;  %v770_v26 = vld [vmem:[%s1431_s1 + $0xc0] sm:$0xff] (!%p193_p2)  ;;  %v771_v27 = vld [vmem:[%s1431_s1 + $0xc8] sm:$0xff] (!%p193_p2) }
   0xb   : > { %v1039_v25 = vpack.c.bf16 (!%p193_p2), %v252_v23, %v251_v22  ;;  %v253_v28 = vld [vmem:[%s1431_s1 + $0x40] sm:$0xff] (!%p193_p2)  ;;  %v254_v29 = vld [vmem:[%s1431_s1 + $0x48] sm:$0xff] (!%p193_p2)  ;;  %v1018_v30 = vpack.c.bf16 (!%p193_p2), %v771_v27, %v770_v26  ;;  %v772_v32 = vld [vmem:[%s1431_s1 + $0xd0] sm:$0xff] (!%p193_p2) }
   0xc   : > { %1010 = vmatpush3.bf16.msra.mxu1 (!%p193_p2), %v1009_v12  ;;  %v1042_v31 = vpack.c.bf16 (!%p193_p2), %v254_v29, %v253_v28  ;;  %v773_v33 = vld [vmem:[%s1431_s1 + $0xd8] sm:$0xff] (!%p193_p2)  ;;  %v255_v34 = vld [vmem:[%s1431_s1 + $0x50] sm:$0xff] (!%p193_p2)  ;;  %v774_v38 = vld [vmem:[%s1431_s1 + $0xe0] sm:$0xff] (!%p193_p2) }
   0xd   : > { %1034 = vmatpush3.bf16.msra.mxu0 %v1033_v13  ;;  %1011 = vmatprep.subr.bf16.mxu1 %v1123_v3  ;;  %v256_v35 = vld [vmem:[%s1431_s1 + $0x58] sm:$0xff]  ;;  %v1021_v36 = vpack.c.bf16 %v773_v33, %v772_v32  ;;  %v775_v39 = vld [vmem:[%s1431_s1 + $0xe8] sm:$0xff]  ;;  %v257_v40 = vld [vmem:[%s1431_s1 + $0x60] sm:$0xff]  ;;  %s1437_s19 = smov (!%p227_p3, %s752_s19), 1 }
   0xe   : > { %1035 = vmatprep.subr.bf16.mxu0 %v1123_v3  ;;  %v1045_v37 = vpack.c.bf16 %v256_v35, %v255_v34  ;;  %v258_v41 = vld [vmem:[%s1431_s1 + $0x68] sm:$0xff]  ;;  %v1024_v42 = vpack.c.bf16 %v775_v39, %v774_v38  ;;  %v776_v44 = vld [vmem:[%s1431_s1 + $0xf0] sm:$0xff]  ;;  %v777_v45 = vld [vmem:[%s1431_s1 + $0xf8] sm:$0xff]  ;;  %s796_s13 = sshll.u32 %s1437_s19, 5  ;;  %s761_s23 = sshll.u32 %s1437_s19, 2 }
   0xf   : > { %v1048_v43 = vpack.c.bf16 %v258_v41, %v257_v40  ;;  %v259_v46 = vld [vmem:[%s1431_s1 + $0x70] sm:$0xff]  ;;  %v260_v47 = vld [vmem:[%s1431_s1 + $0x78] sm:$0xff]  ;;  %v1027_v48 = vpack.c.bf16 %v777_v45, %v776_v44  ;;  %s1289_s16 = scalar_lea.vmem %s1430_s0, %s796_s13  ;;  %v516_v50 = vld [vmem:[%s1432_s2] sm:$0xff]  ;;  %s243_s26 = scalar_lea.vmem %s1435_s5, %s761_s23 }
  0x10   : > { %1013 = vmatpush3.bf16.msra.mxu1 %v1012_v18  ;;  %v1051_v49 = vpack.c.bf16 %v260_v47, %v259_v46  ;;  %v517_v51 = vld [vmem:[%s1432_s2 + $0x8] sm:$0xff]  ;;  %v778_v52 = vld [vmem:[%s1431_s1 + $0x100] sm:$0xff]  ;;  %v518_v58 = vld [vmem:[%s1432_s2 + $0x10] sm:$0xff] }
  0x11   : > { %1037 = vmatpush3.bf16.msra.mxu0 %v1036_v19  ;;  %1014 = vmatprep.subr.bf16.mxu1 %v1123_v3  ;;  %v779_v53 = vld [vmem:[%s1431_s1 + $0x108] sm:$0xff]  ;;  %v1078_v55 = vpack.c.bf16 %v517_v51, %v516_v50  ;;  %v244_v56 = vld [vmem:[%s1289_s16] sm:$0xff]  ;;  %v519_v59 = vld [vmem:[%s1432_s2 + $0x18] sm:$0xff] }
  0x12   : > { %1038 = vmatprep.subr.bf16.mxu0 %v1123_v3  ;;  %v1305_v54 = vld [vmem:[%s1289_s16 + $0x8] sm:$0xff]  ;;  %v1054_v57 = vpack.c.bf16 %v779_v53, %v778_v52  ;;  %v780_v60 = vld [vmem:[%s1431_s1 + $0x110] sm:$0xff]  ;;  %v781_v61 = vld [vmem:[%s1431_s1 + $0x118] sm:$0xff]  ;;  %v1081_v62 = vpack.c.bf16 %v519_v59, %v518_v58 }
  0x13   : > { %v1057_v63 = vpack.c.bf16 %v781_v61, %v780_v60  ;;  %v520_v0 = vld [vmem:[%s1432_s2 + $0x20] sm:$0xff]  ;;  %v521_v1 = vld [vmem:[%s1432_s2 + $0x28] sm:$0xff]  ;;  %v522_v7 = vld [vmem:[%s1432_s2 + $0x30] sm:$0xff] }
  0x14   : > { %1016 = vmatpush3.bf16.msra.mxu1 %v1015_v24  ;;  %v782_v2 = vld [vmem:[%s1431_s1 + $0x120] sm:$0xff]  ;;  %v783_v4 = vld [vmem:[%s1431_s1 + $0x128] sm:$0xff]  ;;  %v1084_v5 = vpack.c.bf16 %v521_v1, %v520_v0  ;;  %v523_v8 = vld [vmem:[%s1432_s2 + $0x38] sm:$0xff] }
  0x15   : > { %1040 = vmatpush3.bf16.msra.mxu0 %v1039_v25  ;;  %1017 = vmatprep.subr.bf16.mxu1 %v1123_v3  ;;  %v1060_v6 = vpack.c.bf16 %v783_v4, %v782_v2  ;;  %v784_v9 = vld [vmem:[%s1431_s1 + $0x130] sm:$0xff]  ;;  %v785_v10 = vld [vmem:[%s1431_s1 + $0x138] sm:$0xff]  ;;  %v524_v13 = vld [vmem:[%s1432_s2 + $0x40] sm:$0xff] }
  0x16   : > { %1041 = vmatprep.subr.bf16.mxu0 %v1123_v3  ;;  %v1063_v12 = vpack.c.bf16 %v785_v10, %v784_v9  ;;  %v525_v14 = vld [vmem:[%s1432_s2 + $0x48] sm:$0xff]  ;;  %v786_v15 = vld [vmem:[%s1431_s1 + $0x140] sm:$0xff]  ;;  %v526_v19 = vld [vmem:[%s1432_s2 + $0x50] sm:$0xff] }
  0x17   : > { %v787_v16 = vld [vmem:[%s1431_s1 + $0x148] sm:$0xff]  ;;  %v1090_v17 = vpack.c.bf16 %v525_v14, %v524_v13  ;;  %v527_v20 = vld [vmem:[%s1432_s2 + $0x58] sm:$0xff]  ;;  %v788_v21 = vld [vmem:[%s1431_s1 + $0x150] sm:$0xff] }
  0x18   : > { %1019 = vmatpush3.bf16.msra.mxu1 %v1018_v30  ;;  %v1066_v18 = vpack.c.bf16 %v787_v16, %v786_v15  ;;  %v789_v22 = vld [vmem:[%s1431_s1 + $0x158] sm:$0xff]  ;;  %v1093_v23 = vpack.c.bf16 %v527_v20, %v526_v19  ;;  %v528_v25 = vld [vmem:[%s1432_s2 + $0x60] sm:$0xff]  ;;  %v529_v26 = vld [vmem:[%s1432_s2 + $0x68] sm:$0xff] }
  0x19   : > { %1043 = vmatpush3.bf16.msra.mxu0 %v1042_v31  ;;  %1020 = vmatprep.subr.bf16.mxu1 %v1123_v3  ;;  %v1069_v24 = vpack.c.bf16 %v789_v22, %v788_v21  ;;  %v790_v27 = vld [vmem:[%s1431_s1 + $0x160] sm:$0xff]  ;;  %v791_v28 = vld [vmem:[%s1431_s1 + $0x168] sm:$0xff]  ;;  %v1096_v29 = vpack.c.bf16 %v529_v26, %v528_v25  ;;  %v792_v31 = vld [vmem:[%s1431_s1 + $0x170] sm:$0xff] }
  0x1a   : > { %1044 = vmatprep.subr.bf16.mxu0 %v1123_v3  ;;  %v1072_v30 = vpack.c.bf16 %v791_v28, %v790_v27  ;;  %v530_v32 = vld [vmem:[%s1432_s2 + $0x70] sm:$0xff]  ;;  %v531_v33 = vld [vmem:[%s1432_s2 + $0x78] sm:$0xff]  ;;  %v419_v35 = vld [vmem:[%s1289_s16] sm:$0xfe] }
  0x1b   : > { %v793_v34 = vld [vmem:[%s1431_s1 + $0x178] sm:$0xff]  ;;  %v441_v39 = vrot.slane %v419_v35, 1 }
  0x1c   : > { %1022 = vmatpush3.bf16.msra.mxu1 %v1021_v36  ;;  %v420_v36 = vld [vmem:[%s1289_s16 + $0x10] sm:$0x1]  ;;  %v1075_v38 = vpack.c.bf16 %v793_v34, %v792_v31  ;;  %s759_s16 = sshll.u32 %s1437_s19, 3 }
  0x1d   : > { %1046 = vmatpush3.bf16.msra.mxu0 %v1045_v37  ;;  %1023 = vmatprep.subr.bf16.mxu1 %v1123_v3  ;;  %v1099_v37 = vpack.c.bf16 %v531_v33, %v530_v32  ;;  %v442_v40 = vrot.slane %v420_v36, 1  ;;  %s239_s17 = scalar_lea.vmem %s1434_s4, %s759_s16  ;;  %s235_s22 = scalar_lea.vmem %s1433_s3, %s759_s16 }
  0x1e   : > { %1047 = vmatprep.subr.bf16.mxu0 %v1123_v3 }
  0x1f   : > { %v443_v41 = vsel %vm440_vm1, %v441_v39, %v442_v40 }
  0x20   : > { %1025 = vmatpush3.bf16.msra.mxu1 %v1024_v42 }
  0x21   : > { %1049 = vmatpush3.bf16.msra.mxu0 %v1048_v43  ;;  %1026 = vmatprep.subr.bf16.mxu1 %v1123_v3 }
  0x22   : > { %1050 = vmatprep.subr.bf16.mxu0 %v1123_v3 }
  0x24   : > { %1028 = vmatpush3.bf16.msra.mxu1 %v1027_v48 }
  0x25   : > { %1052 = vmatpush3.bf16.msra.mxu0 %v1051_v49  ;;  %1077 = vmatprep.subr.bf16.mxu1 %v1123_v3 }
  0x26   : > { %1053 = vmatprep.subr.bf16.mxu0 %v1123_v3 }
  0x27   : > { %898 = vmatmul.mubr.f32.vlgmr.msra.gmra.mrb[0].mxu1 %v1305_v54 }
  0x28   : > { %933 = vmatmul.mubr.f32.vlgmr.msra.gmra.mrb[0].mxu0 %v244_v56  ;;  %1079 = vmatpush3.bf16.msra.mxu1 %v1078_v55 }
  0x29   : > { %1055 = vmatpush3.bf16.msra.mxu0 %v1054_v57  ;;  %1080 = vmatprep.subr.bf16.mxu1 %v1123_v3 }
  0x2a   : > { %1056 = vmatprep.subr.bf16.mxu0 %v1123_v3  ;;  %967 = vmatprep.mubr.msk.f32.mxu0 %vm1124_vm0, %v1125_v11 }
  0x2b   : > { %1002 = vmatprep.mubr.msk.f32.mxu1 %vm1124_vm0, %v1125_v11  ;;  %v1087_v11 = vpack.c.bf16 %v523_v8, %v522_v7 }
  0x2c   : > { %1082 = vmatpush3.bf16.msra.mxu1 %v1081_v62 }
  0x2d   : > { %1058 = vmatpush3.bf16.msra.mxu0 %v1057_v63  ;;  %1083 = vmatprep.subr.bf16.mxu1 %v1123_v3 }
  0x2e   : > { %1059 = vmatprep.subr.bf16.mxu0 %v1123_v3 }
  0x30   : > { %1085 = vmatpush3.bf16.msra.mxu1 %v1084_v5 }
  0x31   : > { %1061 = vmatpush3.bf16.msra.mxu0 %v1060_v6  ;;  %1086 = vmatprep.subr.bf16.mxu1 %v1123_v3 }
  0x32   : > { %1062 = vmatprep.subr.bf16.mxu0 %v1123_v3 }
  0x34   : > { %1088 = vmatpush3.bf16.msra.mxu1 %v1087_v11 }
  0x35   : > { %1064 = vmatpush3.bf16.msra.mxu0 %v1063_v12  ;;  %1089 = vmatprep.subr.bf16.mxu1 %v1123_v3 }
  0x36   : > { %1065 = vmatprep.subr.bf16.mxu0 %v1123_v3 }
  0x38   : > { %1091 = vmatpush3.bf16.msra.mxu1 %v1090_v17 }
  0x39   : > { %1067 = vmatpush3.bf16.msra.mxu0 %v1066_v18  ;;  %1092 = vmatprep.subr.bf16.mxu1 %v1123_v3 }
  0x3a   : > { %1068 = vmatprep.subr.bf16.mxu0 %v1123_v3 }
  0x3c   : > { %1094 = vmatpush3.bf16.msra.mxu1 %v1093_v23 }
  0x3d   : > { %1070 = vmatpush3.bf16.msra.mxu0 %v1069_v24  ;;  %1095 = vmatprep.subr.bf16.mxu1 %v1123_v3 }
  0x3e   : > { %1071 = vmatprep.subr.bf16.mxu0 %v1123_v3 }
  0x40   : > { %1097 = vmatpush3.bf16.msra.mxu1 %v1096_v29 }
  0x41   : > { %1073 = vmatpush3.bf16.msra.mxu0 %v1072_v30  ;;  %1098 = vmatprep.subr.bf16.mxu1 %v1123_v3 }
  0x42   : > { %1074 = vmatprep.subr.bf16.mxu0 %v1123_v3 }
  0x44   : > { %1100 = vmatpush3.bf16.msra.mxu1 %v1099_v37 }
  0x45   : > { %1076 = vmatpush3.bf16.msra.mxu0 %v1075_v38 }
  0x47   : > { %1003 = vmatmul.mubr.f32.vlgmr.msra.gmra.mrb[2].mxu1 %v1305_v54 }
  0x48   : > { %968 = vmatmul.mubr.f32.vlgmr.msra.gmra.mrb[0].mxu0 %v443_v41 }
  0xfa   : > { %v345_v42 = vpop.f32.mrb[0].mxu1 }
  0xfb   : > { %v899_v43 = vpop.f32.mrb[1].mxu1 }
 0x11a   : > { %v598_v44 = vpop.f32.mrb[2].mxu1 }
 0x11b   : > { %v511_v45 = vpop.f32.mrb[0].mxu0  ;;  %603 = vst [vmem:[%s239_s17] sm:$0xff] %v598_v44  ;;  %v617_v3 = vrot.slane %v598_v44, 4  ;;  %v623_v46 = vmul.f32 %v598_v44, %v598_v44  ;;  %v1004_v47 = vpop.f32.mrb[3].mxu1 }
 0x11c   : > { %v1101_v48 = vadd.f32 %v511_v45, %v345_v42  ;;  %v969_v49 = vpop.f32.mrb[1].mxu0 }
 0x11d   : > { %v618_v50 = vadd.f32 %v617_v3, %v598_v44  ;;  %v624_v51 = vrot.slane %v623_v46, 4 }
 0x11e   : > { %v604_v52 = vrot.slane %v1101_v48, 4  ;;  %v610_v53 = vmul.f32 %v1101_v48, %v1101_v48  ;;  %602 = vst [vmem:[%s235_s22] sm:$0xff] %v1101_v48 }
 0x11f   : > { %v619_v54 = vrot.slane %v618_v50, 2  ;;  %v625_v55 = vadd.f32 %v624_v51, %v623_v46 }
 0x120   : > { %v605_v56 = vadd.f32 %v1101_v48, %v604_v52  ;;  %v611_v57 = vrot.slane %v610_v53, 4 }
 0x121   : > { %v626_v58 = vrot.slane %v625_v55, 2  ;;  %v620_v61 = vadd.f32 %v619_v54, %v618_v50 }
 0x122   : > { %v606_v59 = vrot.slane %v605_v56, 2  ;;  %v612_v60 = vadd.f32 %v611_v57, %v610_v53 }
 0x123   : > { %v627_v0 = vadd.f32 %v626_v58, %v625_v55  ;;  %v621_v4 = vrot.slane %v620_v61, 1 }
 0x124   : > { %v607_v62 = vadd.f32 %v606_v59, %v605_v56  ;;  %v613_v63 = vrot.slane %v612_v60, 2 }
 0x125   : > { %v628_v6 = vrot.slane %v627_v0, 1  ;;  %v622_v9 = vadd.f32 %v621_v4, %v620_v61 }
 0x126   : > { %v608_v1 = vrot.slane %v607_v62, 1  ;;  %v614_v2 = vadd.f32 %v613_v63, %v612_v60 }
 0x127   : > { %v629_v10 = vadd.f32 %v628_v6, %v627_v0 }
 0x128   : > { %v615_v5 = vrot.slane %v614_v2, 1  ;;  %v609_v7 = vadd.f32 %v608_v1, %v607_v62 }
 0x12a   : > { %v616_v8 = vadd.f32 %v615_v5, %v614_v2 }
 0x12c   : > { %v631_v11 = vsel %vm630_vm2, %v609_v7, %v616_v8 }
 0x12d   : > { %v633_v12 = vsel %vm632_vm3, %v631_v11, %v622_v9 }
 0x12e   : > { %v635_v13 = vsel %vm634_vm4, %v633_v12, %v629_v10 }
 0x12f   : > { %636 = vst [vmem:[%s243_s26] sm:$0xf] %v635_v13 }
 0x130 PF: > { %s16_s18 = sadd.s32 1, %s1121_s18  }
 0x131   : > { %p13_p4 = scmp.ge.s32.totalorder %s16_s18, 4  }
 0x133   :  { %15 = sbr.rel (!%p13_p4) target bundleno = 1 (0x1), region = 88 }

</bundles_post_ra>
